<compile_context>
chip_gen: v7x
topology: tpu7x:2x2x1
jax: 0.10.0
libtpu: 0.0.40
codegen_flags: <defaults>
</compile_context>

<pallas_src>
import functools

import jax
import jax.numpy as jnp
from jax.experimental import pallas as pl
from jax.experimental.pallas import tpu as pltpu

# Net(layers, scale): layers[0]=6, layers[1]=9 forced by the frozen fc0 weight.
LAYERS = [6, 9, 32, 32, 32, 1]
SCALE = 1.0

# Frozen fc0 weight from the reference module, PyTorch layout (out=9, in=6).
FC0_WEIGHT = jnp.array(
    [[1.0, 0.0, 0.0, 0.0, 0.0, 0.0],
     [0.0, 1.0, 0.0, 0.0, 0.0, 0.0],
     [0.0, 0.0, 1.0, 0.0, 0.0, 0.0],
     [0.0, 0.0, 0.0, 1.0, 0.0, 0.0],
     [0.0, 0.0, 0.0, 0.0, 1.0, 0.0],
     [0.0, 0.0, 0.0, 0.0, 0.0, 1.0],
     [1.0, 0.0, 0.0, -1.0, 0.0, 0.0],
     [0.0, 1.0, 0.0, 0.0, -1.0, 0.0],
     [0.0, 0.0, 1.0, 0.0, 0.0, -1.0]],
    dtype=jnp.float32,
)


def _round_up(n, m):
    return (n + m - 1) // m * m


def _tpu_kind():
    try:
        return jax.devices()[0].device_kind.lower()
    except Exception:  # pragma: no cover - defensive
        return ""


def _default_compute_dtype():
    # bf16 VPU/EUP exists on v6e/v7x; keep f32 on v5e and older / unknown.
    kind = _tpu_kind()
    if "v6" in kind or "v7" in kind:
        return jnp.bfloat16
    return jnp.float32


def _default_min_tiles():
    # v7x has 2 TensorCores per chip; give the "parallel" grid axis >= 2 steps.
    return 2 if "v7" in _tpu_kind() else 1


def net_kernel(xt_ref, chd_ref, cout_ref, o_ref, *, f_in, hdim, n_inner,
               compute_dtype, first_gate_folded):
    # Consolidated constants: chd = [W01 | b1 | gates], cout = [Wl | bl].
    w01 = chd_ref[:, 0:f_in]                                  # (H, f_in) f32 (gate0*scale folded)
    b1 = chd_ref[:, f_in:f_in + 1]                            # (H, 1)    f32
    gates = chd_ref[:, f_in + 1:f_in + 1 + n_inner].astype(compute_dtype)  # (H, n_inner)

    # Fused fc0 + fcs[0] (+ folded first gate):  (H, f_in) @ (f_in, TN) + b1.
    # Batch sits on lanes, so this and everything below is lane-dense.
    h = jnp.dot(w01, xt_ref[...], preferred_element_type=jnp.float32) + b1

    # Gate/tanh chain in compute_dtype: bf16 on v6e/v7x (EUP is the binding
    # unit and is bf16-capable there), f32 on v5e.
    h = h.astype(compute_dtype)

    # Exactly like the reference forward: two sweeps of per-feature gate +
    # tanh.  NOTE: the intermediate Linear layers (fc2..fc_{L-3}) are *not*
    # applied inside this loop in the reference code, only the gate params.
    for sweep in range(2):
        for i in range(n_inner):
            if sweep == 0 and i == 0 and first_gate_folded:
                h = jnp.tanh(h)                               # gate already folded into w01/b1
            else:
                h = jnp.tanh(gates[:, i:i + 1] * h)           # (H,1) bcast over lanes

    wl = cout_ref[:, 0:hdim].astype(compute_dtype)            # (O, H)
    bl = cout_ref[:, hdim:hdim + 1]                           # (O, 1) f32
    # fcs[-1]: (O, H) @ (H, TN) + bl -> (O, TN), lane-dense output store.
    o_ref[...] = (jnp.dot(wl, h, preferred_element_type=jnp.float32) + bl
                  ).astype(o_ref.dtype)


def net_forward(x, w1, b1, p_stack, wl, bl, *, scale=SCALE, tn=32768,
                compute_dtype=None, min_tiles=None):
    """x: (N, 6) f32.  Weights in PyTorch (out, in) layout.  Returns (N, 1).

    Call this under jax.jit so the X^T transpose fuses with upstream ops
    instead of costing a standalone HBM pass.
    """
    if compute_dtype is None:
        compute_dtype = _default_compute_dtype()
    if min_tiles is None:
        min_tiles = _default_min_tiles()

    n, f_in = x.shape
    hdim = w1.shape[0]
    o = wl.shape[0]
    n_inner = p_stack.shape[0]

    # Fuse the frozen, bias-free fc0 into fcs[0]:  W01 = W1 @ W0   (H, f_in).
    w01 = w1 @ FC0_WEIGHT
    # Fold scale into the gate params; features on sublanes, gate idx on lanes.
    gates = (p_stack.astype(jnp.float32) * jnp.float32(scale)).T       # (H, n_inner)
    b1c = b1.reshape(hdim, 1)
    # Fold the first gate of the first sweep into the fused layer (the kernel
    # then only applies tanh at that step); the second sweep still uses it.
    first_gate_folded = n_inner > 0
    if first_gate_folded:
        g0 = gates[:, 0:1]
        w01 = w01 * g0
        b1c = b1c * g0
    consts_hd = jnp.concatenate([w01, b1c, gates], axis=1)             # (H, f_in+1+n_inner)
    consts_out = jnp.concatenate([wl, bl.reshape(o, 1)], axis=1)       # (O, H+1)

    # Batch-on-lanes layout: X^T is (f_in, N).  No wrapper-side padding: the
    # partial edge block is masked by Pallas; padded-lane garbage only flows
    # column-wise (matmul + elementwise) and is never stored back.
    x_t = x.T

    tn = _round_up(max(tn, 128), 128)
    n128 = _round_up(n, 128)
    tn_eff = min(tn, n128)
    if min_tiles > 1:
        tn_eff = min(tn_eff, _round_up(pl.cdiv(n, min_tiles), 128))
    tn_eff = max(tn_eff, 128)
    grid = pl.cdiv(n, tn_eff)

    cost = pl.CostEstimate(
        flops=2 * n * hdim * (f_in + o) + (2 * n_inner + 1) * n * hdim + n * o,
        transcendentals=2 * n_inner * n * hdim,
        bytes_accessed=4 * (n * (f_in + o)
                            + hdim * (f_in + 1 + n_inner)
                            + o * (hdim + 1)),
    )

    kernel = functools.partial(
        net_kernel, f_in=f_in, hdim=hdim, n_inner=n_inner,
        compute_dtype=compute_dtype, first_gate_folded=first_gate_folded)

    out_t = pl.pallas_call(
        kernel,
        out_shape=jax.ShapeDtypeStruct((o, n), jnp.float32),
        grid_spec=pltpu.PrefetchScalarGridSpec(
            num_scalar_prefetch=0,
            grid=(grid,),
            in_specs=[
                pl.BlockSpec((f_in, tn_eff), lambda i: (0, i)),              # X^T tile
                pl.BlockSpec((hdim, f_in + 1 + n_inner), lambda i: (0, 0)),  # [W01|b1|gates]
                pl.BlockSpec((o, hdim + 1), lambda i: (0, 0)),               # [Wl|bl]
            ],
            out_specs=pl.BlockSpec((o, tn_eff), lambda i: (0, i)),
        ),
        compiler_params=pltpu.CompilerParams(
            dimension_semantics=("parallel",),
            vmem_limit_bytes=32 * 1024 * 1024,
        ),
        cost_estimate=cost,
    )(x_t, consts_hd, consts_out)

    return out_t.T                                   # (N, O); O==1 so this is a cheap reshape


def init_net_params(key, layers=LAYERS):
    """Deterministic synthetic init matching the module's __init__ shapes.

    Weights are produced in PyTorch (out_features, in_features) layout.
    """
    def xavier_normal(k, fan_out, fan_in):
        std = (2.0 / (fan_in + fan_out)) ** 0.5
        return std * jax.random.normal(k, (fan_out, fan_in), dtype=jnp.float32)

    keys = jax.random.split(key, 2 * len(layers))
    # fcs[0]: Linear(layers[1], layers[2]), xavier weight, bias = 0.01
    w1 = xavier_normal(keys[0], layers[2], layers[1])
    b1 = jnp.full((layers[2],), 0.01, dtype=jnp.float32)

    # self.params[j] = randn(layers[j+2]) for j = 0 .. len(layers)-4
    all_params = [
        jax.random.normal(keys[1 + j], (layers[j + 2],), dtype=jnp.float32)
        for j in range(len(layers) - 3)
    ]
    # forward uses self.params[i] for i in range(1, len(fcs)-1)
    n_fcs = len(layers) - 2
    used = [all_params[i] for i in range(1, n_fcs - 1)]
    p_stack = jnp.stack(used, axis=0)  # (n_inner, H)

    # TODO(synk): fc2..fc_{len-3} weights exist in __init__ but are never used
    # in forward(), so they are not materialized here.

    # fcs[-1]: Linear(layers[-2], layers[-1])
    wl = xavier_normal(keys[-1], layers[-1], layers[-2])
    bl = jnp.full((layers[-1],), 0.01, dtype=jnp.float32)
    return w1, b1, p_stack, wl, bl


def net_reference(x, w1, b1, p_stack, wl, bl, scale=SCALE):
    h = x @ FC0_WEIGHT.T
    h = h @ w1.T + b1
    for _ in range(2):
        for i in range(p_stack.shape[0]):
            h = jnp.tanh(p_stack[i] * h * scale)
    return h @ wl.T + bl


if __name__ == "__main__":
    key = jax.random.PRNGKey(0)
    k_x, k_p = jax.random.split(key)

    # N deliberately not a multiple of 128 to exercise the masked edge block.
    N = 1000
    x = jax.random.normal(k_x, (N, LAYERS[0]), dtype=jnp.float32)
    params = init_net_params(k_p, LAYERS)
    ref = net_reference(x, *params, scale=SCALE)

    # 1) Strict f32 check (all generations); small tile -> multi-step grid.
    fwd_f32 = jax.jit(functools.partial(
        net_forward, scale=SCALE, tn=256, compute_dtype=jnp.float32, min_tiles=2))
    out_f32 = jax.block_until_ready(fwd_f32(x, *params))
    assert out_f32.shape == (N, LAYERS[-1]), out_f32.shape
    assert jnp.allclose(out_f32, ref, atol=1e-4, rtol=1e-4), "f32 kernel mismatch vs reference"

    # 2) Auto-configured production path (bf16 gate/tanh chain on v6e/v7x,
    #    f32 on v5e; default TN=32768, v7x grid>=2 cap).
    fwd_auto = jax.jit(functools.partial(net_forward, scale=SCALE))
    out_auto = jax.block_until_ready(fwd_auto(x, *params))
    assert out_auto.shape == (N, LAYERS[-1]), out_auto.shape
    bf16_used = _default_compute_dtype() == jnp.bfloat16
    tol = 5e-2 if bf16_used else 1e-4
    assert jnp.allclose(out_auto, ref, atol=tol, rtol=tol), "auto kernel mismatch vs reference"

    print("KERNEL_OK")
</pallas_src>

<mosaic_0001>
module attributes {stable_mosaic.version = 11 : i64} {
  func.func @net_kernel(%arg0: i32, %arg1: memref<6x256xf32, #tpu.memory_space<vmem>>, %arg2: memref<32x9xf32, #tpu.memory_space<vmem>>, %arg3: memref<1x33xf32, #tpu.memory_space<vmem>>, %arg4: memref<1x256xf32, #tpu.memory_space<vmem>>) attributes {dimension_semantics = [#tpu.dimension_semantics<parallel>], iteration_bounds = array<i64: 4>, scalar_prefetch = 0 : i64, scratch_operands = 0 : i64, tpu.core_type = #tpu.core_type<tc>, window_params = [{transform_indices = @transform_0, window_bounds = array<i64: 6, 256>}, {pipeline_mode = #tpu.pipeline_mode<synchronous>, transform_indices = @transform_1, window_bounds = array<i64: 32, 9>}, {pipeline_mode = #tpu.pipeline_mode<synchronous>, transform_indices = @transform_2, window_bounds = array<i64: 1, 33>}, {transform_indices = @transform_3, window_bounds = array<i64: 1, 256>}]} {
    %c0 = arith.constant 0 : index
    %c0_0 = arith.constant 0 : index
    %0 = vector.load %arg2[%c0, %c0_0] : memref<32x9xf32, #tpu.memory_space<vmem>>, vector<32x6xf32>
    %c0_1 = arith.constant 0 : index
    %c6 = arith.constant 6 : index
    %1 = vector.load %arg2[%c0_1, %c6] : memref<32x9xf32, #tpu.memory_space<vmem>>, vector<32x1xf32>
    %c0_2 = arith.constant 0 : index
    %c7 = arith.constant 7 : index
    %2 = vector.load %arg2[%c0_2, %c7] : memref<32x9xf32, #tpu.memory_space<vmem>>, vector<32x2xf32>
    %c0_3 = arith.constant 0 : index
    %c0_4 = arith.constant 0 : index
    %3 = vector.load %arg1[%c0_3, %c0_4] : memref<6x256xf32, #tpu.memory_space<vmem>>, vector<6x256xf32>
    %cst = arith.constant dense<0.000000e+00> : vector<32x256xf32>
    %4 = tpu.matmul %0, %3, %cst {dimension_numbers = #tpu.dot_dimension_numbers<[1], [0], [0], [1], [0, 0, 1, 1], [], []>} : vector<32x6xf32>, vector<6x256xf32>, vector<32x256xf32> -> vector<32x256xf32>
    %5 = vector.broadcast %1 : vector<32x1xf32> to vector<32x256xf32>
    %6 = arith.addf %4, %5 : vector<32x256xf32>
    %7 = math.tanh %6 : vector<32x256xf32>
    %8 = vector.extract_strided_slice %2 {offsets = [0, 1], sizes = [32, 1], strides = [1, 1]} : vector<32x2xf32> to vector<32x1xf32>
    %9 = vector.broadcast %8 : vector<32x1xf32> to vector<32x256xf32>
    %10 = arith.mulf %9, %7 : vector<32x256xf32>
    %11 = math.tanh %10 : vector<32x256xf32>
    %12 = vector.extract_strided_slice %2 {offsets = [0, 0], sizes = [32, 1], strides = [1, 1]} : vector<32x2xf32> to vector<32x1xf32>
    %13 = vector.broadcast %12 : vector<32x1xf32> to vector<32x256xf32>
    %14 = arith.mulf %13, %11 : vector<32x256xf32>
    %15 = math.tanh %14 : vector<32x256xf32>
    %16 = vector.extract_strided_slice %2 {offsets = [0, 1], sizes = [32, 1], strides = [1, 1]} : vector<32x2xf32> to vector<32x1xf32>
    %17 = vector.broadcast %16 : vector<32x1xf32> to vector<32x256xf32>
    %18 = arith.mulf %17, %15 : vector<32x256xf32>
    %19 = math.tanh %18 : vector<32x256xf32>
    %c0_5 = arith.constant 0 : index
    %c0_6 = arith.constant 0 : index
    %20 = vector.load %arg3[%c0_5, %c0_6] : memref<1x33xf32, #tpu.memory_space<vmem>>, vector<1x32xf32>
    %c0_7 = arith.constant 0 : index
    %c32 = arith.constant 32 : index
    %21 = vector.load %arg3[%c0_7, %c32] : memref<1x33xf32, #tpu.memory_space<vmem>>, vector<1x1xf32>
    %cst_8 = arith.constant dense<0.000000e+00> : vector<1x256xf32>
    %22 = tpu.matmul %20, %19, %cst_8 {dimension_numbers = #tpu.dot_dimension_numbers<[1], [0], [0], [1], [0, 0, 1, 1], [], []>} : vector<1x32xf32>, vector<32x256xf32>, vector<1x256xf32> -> vector<1x256xf32>
    %23 = vector.broadcast %21 : vector<1x1xf32> to vector<1x256xf32>
    %24 = arith.addf %22, %23 : vector<1x256xf32>
    %c0_9 = arith.constant 0 : index
    %c0_10 = arith.constant 0 : index
    %25 = vector.load %arg4[%c0_9, %c0_10] : memref<1x256xf32, #tpu.memory_space<vmem>>, vector<1x256xf32>
    tpu.vector_store %arg4[%c0_9, %c0_10], %24 {strides = array<i32>} : memref<1x256xf32, #tpu.memory_space<vmem>>, vector<1x256xf32>,
    return
  }
  func.func @transform_0(%arg0: i32) -> (i32, i32) {
    %c0_i32 = arith.constant 0 : i32
    %c0_i32_0 = arith.constant 0 : i32
    return %c0_i32, %arg0 : i32, i32
  }
  func.func @transform_1(%arg0: i32) -> (i32, i32) {
    %c0_i32 = arith.constant 0 : i32
    %c0_i32_0 = arith.constant 0 : i32
    %c0_i32_1 = arith.constant 0 : i32
    return %c0_i32, %c0_i32_0 : i32, i32
  }
  func.func @transform_2(%arg0: i32) -> (i32, i32) {
    %c0_i32 = arith.constant 0 : i32
    %c0_i32_0 = arith.constant 0 : i32
    %c0_i32_1 = arith.constant 0 : i32
    return %c0_i32, %c0_i32_0 : i32, i32
  }
  func.func @transform_3(%arg0: i32) -> (i32, i32) {
    %c0_i32 = arith.constant 0 : i32
    %c0_i32_0 = arith.constant 0 : i32
    return %c0_i32, %arg0 : i32, i32
  }
}

</mosaic_0001>

<bundles_post_ra>
// kernel: net_forward.1
= control target key start
LH: loop header
LB: loop body
LE: loop exit
PB: predicated region body
PF: predicated region fallthrough
CT: control target
= control target key end

     0   :  { %8 = vsyncpa [#allocation3], 0  ;;  %s935_s0 = inlined_call_operand.vmem [shape: f32[6,1000], index: 0, kind: input, shape index: {}]   ;;  %s936_s1 = inlined_call_operand.vmem [shape: f32[32,9], index: 1, kind: input, shape index: {}]   ;;  %s937_s2 = inlined_call_operand.vmem [shape: f32[1,33], index: 2, kind: input, shape index: {}]   ;;  %s938_s3 = inlined_call_operand.hbm [shape: f32[1,1000], index: 3, kind: output, shape index: {}]  }
   0x1   :  { %10 = vsyncpa [#allocation3 + $0x1], 0  ;;  %s807_s12 = smov 0   ;;  %s809_s13 = smov 0  }
   0x2   :  { %s811_s14 = smov 0   ;;  %s813_s15 = smov 0  }
   0x3 LB: > { %s828_s16 = sadd.s32 4294967295, %s778_s15   ;;  %s572_s17 = sadd.s32 4294967294, %s778_s15   ;;  %s778_s15 = sphi %s813_s15, %s944_s15   ;;  %s774_s14 = sphi %s811_s14, %s943_s14   ;;  %s770_s13 = sphi %s809_s13, %s942_s13   ;;  %s766_s12 = sphi %s807_s12, %s941_s12  }
   0x4   : > { %s832_s18 = sadd.s32 1, %s778_s15   ;;  %s91_s19 = sadd.s32 1, %s774_s14 }
   0x5   : > { %s88_s20 = ssub.s32 %s778_s15, %s832_s18  ;;  %p101_p0 = scmp.ne.s32.totalorder %s774_s14, %s770_s13 }
   0x6   : > { %p89_p1 = scmp.eq.s32.totalorder %s88_s20, 0  ;;  %p102_p2 = scmp.eq.s32.totalorder %s828_s16, 3 }
   0x7   : > { %p107_p3 = scmp.ne.s32.totalorder %s770_s13, %s766_s12  ;;  %p108_p4 = scmp.eq.s32.totalorder %s572_s17, 3 }
   0x8   : > { %s843_s21 = scalar_select %p89_p1, %s774_s14, %s91_s19  }
   0x9   : > { %p845_p5 = por %p102_p2, %p101_p0  ;;  %p849_p6 = por %p108_p4, %p107_p3 }
   0xa   : > { %p575_p7 = scmp.ge.s32.totalorder %s778_s15, 1  ;;  %p141_p8 = scmp.lt.s32.totalorder %s778_s15, 5 }
   0xc   : > { %p142_p9 = pnand %p575_p7, %p141_p8 }
   0xd   : > { %s577_s24 = sshll.u32 (!%p142_p9), %s828_s16, 1  ;;  %v780_v0 = vmov (!%p142_p9), 0.0   ;;  %v172_v1 = vld [vmem:[%s936_s1] sm:$0xff] (!%p142_p9)  ;;  %v174_v2 = vld [vmem:[%s936_s1 + $0x10] sm:$0xff] (!%p142_p9)  ;;  %v781_v3 = vmov (!%p142_p9), 6   ;;  %vm207_vm0 = vcmask (!%p142_p9), 1045504  }
   0xe   : > { %145 = sbr.rel (%p142_p9) target bundleno = 547 (0x223), region = 32  ;;  %p166_p10 = scmp.lt.s32.totalorder (!%p142_p9), %s577_s24, 7  ;;  %278 = vmatprep.mubr.f32.mxu0 (!%p142_p9), %v780_v0  ;;  %468 = vmatprep.mubr.f32.mxu1 (!%p142_p9), %v780_v0  ;;  %v173_v4 = vld [vmem:[%s936_s1 + $0x8] sm:$0xff] (!%p142_p9)  ;;  %v175_v5 = vld [vmem:[%s936_s1 + $0x18] sm:$0xff] (!%p142_p9)  ;;  %vm198_vm1 = vcmask (!%p142_p9), 48128   ;;  %v782_v8 = vmov (!%p142_p9), 8  }
   0xf   : > { %645 = vset.pattern.permute.xlu0 (!%p142_p9), %v781_v3  ;;  %646 = vset.pattern.permute.xlu1 (!%p142_p9), %v781_v3  ;;  %v783_v9 = vmov (!%p142_p9), 7   ;;  %v878_v10 = vld [vmem:[%s937_s2] sm:$0x1] (!%p142_p9)  ;;  %v784_v11 = vmov (!%p142_p9), 32   ;;  %vm401_vm2 = vcmask (!%p142_p9), 261120   ;;  %s162_s17 = sand.u32 (!%p142_p9), 1, %s770_s13  }
  0x10   : > { %180 = vperm.xlu0 (!%p142_p9), %645, %v172_v1   ;;  %190 = vperm.xlu1 (!%p142_p9), %646, %v174_v2   ;;  %s576_s19 = sshll.u32 (!%p142_p9), %s162_s17, 1  ;;  %s591_s20 = sshll.u32 (!%p142_p9), %s828_s16, 5 }
  0x11   : > { %s893_s28 = scalar_lea.hbm (!%p142_p9), %s938_s3, %s591_s20  ;;  %s786_s16 = smov (!%p142_p9), [#allocation2]  }
  0x12   : > { %s720_s4 = sshll.u32 (!%p142_p9), %s786_s16, 4  ;;  %s721_s4 = int_to_ptr.vmem [resolvable:$false] %s720_s4 }
  0x14   : > { %185 = vperm.xlu0 (!%p142_p9), %645, %v173_v4   ;;  %195 = vperm.xlu1 (!%p142_p9), %646, %v175_v5  }
  0x15   : > { %s946_s24 = smov (!%p166_p10, %s577_s24), 7 }
  0x16   : > { %s578_s29 = sshll.u32 %s946_s24, 3  ;;  %s164_s24 = scalar_lea.vmem [#allocation2], %s576_s19 }
  0x17   : > { %s169_s5 = scalar_lea.vmem %s935_s0, %s578_s29  ;;  %s513_s25 = sshll.u32 %s164_s24, 4  ;;  %s895_s25 = int_to_ptr.vmem [resolvable:$true] %s513_s25 }
  0x18   : > { %v177_v6 = vld [vmem:[%s169_s5 + $0x8] sm:$0x3f]  ;;  %v176_v7 = vld [vmem:[%s169_s5] sm:$0x3f]  ;;  %647 = vset.pattern.permute.xlu0 %v782_v8  ;;  %648 = vset.pattern.permute.xlu1 %v782_v8  ;;  %s499_s29 = scalar_lea.sflag [#allocation3], %s162_s17  ;;  %s716_s30 = scalar_lea.vmem %s895_s25, 32 }
  0x19   : > { %579 = vmatprep.subr.msk.mxu0 %vm207_vm0, %v177_v6  ;;  %312 = vperm.xlu0 %647, %v172_v1   ;;  %p717_p11 = scmp.ne.s32.totalorder %s895_s25, %s716_s30  ;;  %s722_s5 = scalar_lea.vmem %s721_s4, 64 }
  0x1a   : > { %580 = vmatpush1.msk.msra.mxu0 %vm207_vm0, %v176_v7  ;;  %316 = vperm.xlu1 %648, %v173_v4   ;;  %p723_p0 = scmp.lt.s32.totalorder %s895_s25, %s721_s4  ;;  %p724_p1 = scmp.lt.s32.totalorder %s722_s5, %s716_s30 }
  0x1b   : > { %581 = vmatmul.mubr.msk.f32.vlgmr.msra.gmra.mrb[0].mxu0 %vm198_vm1, %v172_v1  ;;  %p718_p12 = pnand %p717_p11, %p845_p5 }
  0x1c   : > { %284 = vmatprep.mubr.f32.mxu0 %v780_v0  ;;  %p725_p2 = por %p724_p1, %p723_p0 }
  0x1d   : > { %324 = vperm.xlu0 %647, %v175_v5   ;;  %p719_p13 = pneg %p718_p12 }
  0x1e   : > { %320 = vperm.xlu1 %648, %v174_v2  }
  0x1f   : > { %582 = vmatmul.mubr.msk.f32.gmra.mrb[2].mxu0 %vm198_vm1, %v173_v4  ;;  %p726_p3 = pnand %p725_p2, %p719_p13 }
  0x20   : > { %290 = vmatprep.mubr.f32.mxu0 %v780_v0 }
  0x21   : > { %650 = vset.pattern.permute.xlu0 %v783_v9 }
  0x22   : > { %649 = vset.pattern.permute.xlu1 %v783_v9  ;;  %348 = vperm.xlu0 %650, %v173_v4  }
  0x23   : > { %583 = vmatmul.mubr.msk.f32.gmra.mrb[4].mxu0 %vm198_vm1, %v174_v2  ;;  %344 = vperm.xlu1 %649, %v172_v1  }
  0x24   : > { %296 = vmatprep.mubr.f32.mxu0 %v780_v0 }
  0x26   : > { %651 = vset.pattern.permute.xlu0 %v784_v11 }
  0x27   : > { %584 = vmatmul.mubr.msk.f32.gmra.mrb[6].mxu0 %vm198_vm1, %v175_v5  ;;  %352 = vperm.xlu1 %649, %v174_v2  }
  0x28   : > { %394 = vperm.xlu0 %651, %v878_v10  }
  0x2b   : > { %356 = vperm.xlu1 %649, %v175_v5  }
  0x8f   : > { %v181_v12 = vpop.permute.xlu0 %180  ;;  %v191_v19 = vpop.permute.xlu1 %190 }
  0x93   : > { %v186_v17 = vpop.permute.xlu0 %185  ;;  %v196_v26 = vpop.permute.xlu1 %195 }
  0x98   : > { %v881_v28 = vpop.permute.xlu0 %312 }
  0x99   : > { %v317_v36 = vpop.permute.xlu1 %316 }
  0x9c   : > { %v325_v47 = vpop.permute.xlu0 %324 }
  0x9d   : > { %v321_v42 = vpop.permute.xlu1 %320 }
  0xa1   : > { %v349_v56 = vpop.permute.xlu0 %348 }
  0xa2   : > { %v345_v51 = vpop.permute.xlu1 %344 }
  0xa6   : > { %v353_v61 = vpop.permute.xlu1 %352 }
  0xaa   : > { %v357_v4 = vpop.permute.xlu1 %356 }
  0xee   : > { %v280_v13 = vpop.f32.mrb[0].mxu0 }
  0xef   : > { %v281_v14 = vadd.f32 %v280_v13, %v181_v12  ;;  %v282_v15 = vpop.f32.mrb[1].mxu0 }
  0xf0   : > { %v283_v16 = vadd.f32 %v282_v15, %v181_v12 }
  0xf1   : > { %652 = vtanh.f32 %v281_v14 }
  0xf2   : > { %654 = vtanh.f32 %v283_v16  ;;  %v286_v18 = vpop.f32.mrb[2].mxu0 }
  0xf3   : > { %v287_v20 = vadd.f32 %v286_v18, %v186_v17  ;;  %v288_v21 = vpop.f32.mrb[3].mxu0 }
  0xf4   : > { %v289_v22 = vadd.f32 %v288_v21, %v186_v17 }
  0xf5   : > { %656 = vtanh.f32 %v287_v20 }
  0xf6   : > { %658 = vtanh.f32 %v289_v22  ;;  %v292_v23 = vpop.f32.mrb[4].mxu0 }
  0xf7   : > { %v293_v24 = vadd.f32 %v292_v23, %v191_v19  ;;  %v294_v25 = vpop.f32.mrb[5].mxu0 }
  0xf8   : > { %v295_v27 = vadd.f32 %v294_v25, %v191_v19 }
  0xf9   : > { %660 = vtanh.f32 %v293_v24 }
  0xfa   : > { %662 = vtanh.f32 %v295_v27  ;;  %v298_v29 = vpop.f32.mrb[6].mxu0 }
  0xfb   : > { %v653_v30 = vpop.eup %652  ;;  %v299_v31 = vadd.f32 %v298_v29, %v196_v26  ;;  %v300_v32 = vpop.f32.mrb[7].mxu0 }
  0xfc   : > { %v655_v33 = vpop.eup %654  ;;  %v327_v34 = vmul.f32 %v653_v30, %v881_v28  ;;  %v301_v35 = vadd.f32 %v300_v32, %v196_v26 }
  0xfd   : > { %664 = vtanh.f32 %v299_v31  ;;  %v328_v37 = vmul.f32 %v655_v33, %v881_v28 }
  0xfe   : > { %666 = vtanh.f32 %v327_v34 }
  0xff   : > { %v657_v38 = vpop.eup %656  ;;  %668 = vtanh.f32 %v328_v37  ;;  %v397_v37 = vlaneseq }
 0x100   : > { %v659_v39 = vpop.eup %658  ;;  %670 = vtanh.f32 %v301_v35  ;;  %v329_v40 = vmul.f32 %v657_v38, %v317_v36 }
 0x101   : > { %v330_v41 = vmul.f32 %v659_v39, %v317_v36  ;;  %v398_v38 = vshrl.u32 %v397_v37, 7  ;;  %vm495_vm3 = vcmp.lt.s32.totalorder %v397_v37, 256 }
 0x102   : > { %672 = vtanh.f32 %v329_v40  ;;  %v395_v40 = vpop.permute.xlu0 %394 }
 0x103   : > { %v661_v43 = vpop.eup %660  ;;  %674 = vtanh.f32 %v330_v41  ;;  %v399_v39 = vsub.s32 0, %v398_v38  ;;  %v785_v41 = vmov 1966171168  }
 0x104   : > { %v663_v44 = vpop.eup %662  ;;  %v331_v45 = vmul.f32 %v661_v43, %v321_v42 }
 0x105   : > { %v332_v46 = vmul.f32 %v663_v44, %v321_v42  ;;  %v400_v43 = vrot.slane %v395_v40, %v399_v39 }
 0x106   : > { %676 = vtanh.f32 %v331_v45 }
 0x107   : > { %v665_v48 = vpop.eup %664  ;;  %678 = vtanh.f32 %v332_v46 }
 0x108   : > { %v667_v49 = vpop.eup %666  ;;  %v333_v50 = vmul.f32 %v665_v48, %v325_v47 }
 0x109   : > { %v669_v52 = vpop.eup %668  ;;  %v359_v53 = vmul.f32 %v667_v49, %v345_v51 }
 0x10a   : > { %v671_v54 = vpop.eup %670  ;;  %680 = vtanh.f32 %v333_v50  ;;  %v360_v55 = vmul.f32 %v669_v52, %v345_v51 }
 0x10b   : > { %v334_v57 = vmul.f32 %v671_v54, %v325_v47  ;;  %682 = vtanh.f32 %v359_v53 }
 0x10c   : > { %v673_v58 = vpop.eup %672  ;;  %684 = vtanh.f32 %v360_v55 }
 0x10d   : > { %v675_v59 = vpop.eup %674  ;;  %686 = vtanh.f32 %v334_v57  ;;  %v361_v60 = vmul.f32 %v673_v58, %v349_v56 }
 0x10e   : > { %v362_v62 = vmul.f32 %v675_v59, %v349_v56 }
 0x10f   : > { %688 = vtanh.f32 %v361_v60 }
 0x110   : > { %v677_v63 = vpop.eup %676  ;;  %690 = vtanh.f32 %v362_v62 }
 0x111   : > { %v679_v0 = vpop.eup %678  ;;  %v363_v1 = vmul.f32 %v677_v63, %v353_v61 }
 0x112   : > { %v364_v2 = vmul.f32 %v679_v0, %v353_v61 }
 0x113   : > { %692 = vtanh.f32 %v363_v1 }
 0x114   : > { %v681_v3 = vpop.eup %680  ;;  %694 = vtanh.f32 %v364_v2 }
 0x115   : > { %v683_v5 = vpop.eup %682  ;;  %v365_v6 = vmul.f32 %v681_v3, %v357_v4 }
 0x116   : > { %v685_v7 = vpop.eup %684  ;;  %v375_v8 = vmul.f32 %v683_v5, %v881_v28 }
 0x117   : > { %v687_v9 = vpop.eup %686  ;;  %696 = vtanh.f32 %v365_v6  ;;  %v376_v11 = vmul.f32 %v685_v7, %v881_v28 }
 0x118   : > { %v366_v12 = vmul.f32 %v687_v9, %v357_v4  ;;  %698 = vtanh.f32 %v375_v8 }
 0x119   : > { %v689_v13 = vpop.eup %688 }
 0x11a   : > { %v691_v14 = vpop.eup %690  ;;  %700 = vtanh.f32 %v366_v12  ;;  %v377_v15 = vmul.f32 %v689_v13, %v317_v36 }
 0x11b   : > { %v378_v16 = vmul.f32 %v691_v14, %v317_v36  ;;  %702 = vtanh.f32 %v376_v11 }
 0x11c   : > { %704 = vtanh.f32 %v377_v15 }
 0x11d   : > { %v693_v17 = vpop.eup %692  ;;  %706 = vtanh.f32 %v378_v16 }
 0x11e   : > { %v695_v18 = vpop.eup %694  ;;  %v379_v19 = vmul.f32 %v693_v17, %v321_v42 }
 0x11f   : > { %v380_v21 = vmul.f32 %v695_v18, %v321_v42  ;;  %v479_v42 = vunpack.c.l.s4 %v785_v41 }
 0x120   : > { %708 = vtanh.f32 %v379_v19 }
 0x121   : > { %v697_v20 = vpop.eup %696  ;;  %v480_v44 = vunpack.c.0.s8 %v479_v42 }
 0x122   : > { %v381_v22 = vmul.f32 %v697_v20, %v325_v47  ;;  %v699_v23 = vpop.eup %698 }
 0x123   : > { %v483_v49 = vsub.s32 %v480_v44, %v398_v38 }
 0x124   : > { %v701_v24 = vpop.eup %700  ;;  %710 = vtanh.f32 %v381_v22 }
 0x125   : > { %v703_v25 = vpop.eup %702  ;;  %v382_v26 = vmul.f32 %v701_v24, %v325_v47  ;;  %712 = vtanh.f32 %v380_v21 }
 0x126   : > { %v705_v27 = vpop.eup %704 }
 0x127   : > { %v707_v28 = vpop.eup %706  ;;  %714 = vtanh.f32 %v382_v26  ;;  %v594_v29 = vpack.c.bf16 %v705_v27, %v699_v23 }
 0x128   : > { %v592_v30 = vpack.c.bf16 %v707_v28, %v703_v25 }
 0x12a   : > { %593 = vmatprep.subr.bf16.mxu1 %v592_v30  ;;  %v709_v31 = vpop.eup %708 }
 0x12b   : > { %595 = vmatpush1.bf16.msra.mxu1 %v594_v29 }
 0x12e   : > { %v711_v32 = vpop.eup %710 }
 0x12f   : > { %v598_v33 = vpack.c.bf16 %v711_v32, %v709_v31  ;;  %v713_v34 = vpop.eup %712 }
 0x131   : > { %v715_v35 = vpop.eup %714 }
 0x132   : > { %v596_v36 = vpack.c.bf16 %v715_v35, %v713_v34 }
 0x134   : > { %597 = vmatprep.subr.bf16.mxu1 %v596_v36 }
 0x135   : > { %599 = vmatpush1.bf16.msra.mxu1 %v598_v33 }
 0x138   : > { %585 = vmatmul.mubr.msk.f32.vlgmr.msra.gmra.mrb[0].mxu1 %vm401_vm2, %v878_v10 }
 0x20b   : > { %v470_v45 = vpop.f32.mrb[0].mxu1 }
 0x20c   : > { %v471_v46 = vadd.f32 %v470_v45, %v400_v43  ;;  %v472_v47 = vpop.f32.mrb[1].mxu1 }
 0x20d   : > { %v473_v48 = vadd.f32 %v472_v47, %v400_v43 }
 0x20f   : > { %v477_v50 = vcombine.low %v471_v46, %v473_v48 }
 0x211   : > { %v484_v10 = vrot.slane %v477_v50, %v483_v49 }
 0x213   : > { %v491_v51 = vrot.slane %v484_v10, %v483_v49 }
 0x215   : > { %497 = vst.msk [vmem:[%s164_s24] sm:$0x3] %vm495_vm3, %v491_v51 }
 0x216   : > { %729 = shalt.err (!%p726_p3)
}
 0x217   : > { %s730_s6 = scalar_lea.hbm %s893_s28, 32  ;;  %s734_s9 = scalar_lea.hbm %s938_s3, 128 }
 0x218   : > { %p731_p4 = scmp.ne.s32.totalorder %s893_s28, %s730_s6  ;;  %p735_p9 = scmp.lt.u32.totalorder %s893_s28, %s938_s3 }
 0x219   : > { %p736_p10 = scmp.lt.u32.totalorder %s734_s9, %s730_s6  ;;  %p738_p12 = scmp.lt.u32.totalorder %s730_s6, %s893_s28 }
 0x21a   : > { %p732_p7 = pnand %p731_p4, %p845_p5 }
 0x21b   : > { %p737_p11 = por %p736_p10, %p735_p9 }
 0x21c   : > { %p733_p8 = pneg %p732_p7 }
 0x21d   : > { %p739_p13 = por %p738_p12, %p737_p11 }
 0x21f   : > { %p740_p0 = pnand %p739_p13, %p733_p8 }
 0x221   : > { %743 = shalt.err (!%p740_p0)
}
 0x222   : > { %600 = dma.vmem_to_hbm [thread:$0]  (%p845_p5), %s895_s25, 32, %s893_s28, %s499_s29  }
 0x223 PF: > { %p606_p1 = scmp.ge.s32.totalorder %s778_s15, 2  ;;  %s525_s17 = sand.u32 1, %s766_s12  }
 0x224   : > { %s526_s19 = scalar_lea.sflag [#allocation3], %s525_s17 }
 0x225   : > { %p603_p2 = pnand %p606_p1, %p849_p6 }
 0x227   : > { %761 = dma.done.wait (!%p603_p2), %s526_s19, 32  }
 0x228   : > { %763 = vsyncadd (!%p603_p2), %s526_s19, 4294967264  ;;  %p13_p3 = scmp.ge.s32.totalorder %s832_s18, 6   ;;  %s941_s12 = smov %s770_s13 }
 0x229   : > { %s942_s13 = smov %s774_s14  ;;  %s943_s14 = smov %s843_s21 }
 0x22a   : > { %s944_s15 = smov %s832_s18  ;;  %15 = sbr.rel (!%p13_p3) target bundleno = 3 (0x3), region = 67 }
 0x231   :  { %531 = vsyncpa [#allocation3], 1 }
 0x232   :  { %533 = vsyncpa [#allocation3 + $0x1], 1 }

</bundles_post_ra>
